<compile_context>
chip_gen: v7x
topology: tpu7x:2x2x1
jax: 0.10.0
libtpu: 0.0.40
codegen_flags: <defaults>
</compile_context>

<pallas_src>
import numpy as np
import jax
import jax.numpy as jnp
from jax.experimental import pallas as pl
from jax.experimental.pallas import tpu as pltpu

DEFAULT_TILE_B = 2048    # batch rows per grid step (a few MiB of VMEM even at 4096)


def _round_up(n, m):
    return (n + m - 1) // m * m


def action_nn_kernel(x_ref, a_ref, w1_ref, b1_ref, w2_ref, b2_ref, w3f_ref, out_ref):
    """One batch tile of the forward pass."""
    w1 = w1_ref[...]
    w2 = w2_ref[...]
    w3f = w3f_ref[...]          # [h2, num_actions] = (masks * w3).T, mask folded in
    cdt = w1.dtype              # MXU input dtype (bf16 by default, f32 supported)

    # fc1 + relu (f32 accumulation; elementwise stays f32 -> v5e friendly)
    z1 = jnp.dot(x_ref[...], w1, preferred_element_type=jnp.float32)
    x1 = jnp.maximum(z1 + b1_ref[...], 0.0)

    # fc2 + relu
    z2 = jnp.dot(x1.astype(cdt), w2, preferred_element_type=jnp.float32)
    x2 = jnp.maximum(z2 + b2_ref[...], 0.0)

    # Folded fc3: scores[b, i] = x2[b] @ (masks[i] * w3).  Selecting the requested
    # action: in-kernel iota==index selector (VPU) + lane reduction (XLU).
    scores = jnp.dot(x2.astype(cdt), w3f,
                     preferred_element_type=jnp.float32)                  # [tb, A]
    act = a_ref[...]                                                      # [tb, 1] int32
    lane = jax.lax.broadcasted_iota(jnp.int32, scores.shape, dimension=1)  # [tb, A]
    sel = jnp.sum(jnp.where(lane == act, scores, 0.0),
                  axis=-1, keepdims=True)                                 # [tb, 1]

    out_ref[...] = sel.astype(out_ref.dtype)


def action_nn_forward(x, a, w1, b1, w2, b2, w3, masks, *,
                      tile_b=DEFAULT_TILE_B,
                      compute_dtype=jnp.bfloat16,
                      min_grid_steps=2):
    B, input_dims = x.shape
    num_actions, h2 = masks.shape

    # Fold the 0/1 action masks into the bias-free fc3 weight:
    #   (x2 * masks[a]) @ w3  ==  (x2 @ (masks * w3[:, 0]).T)[:, a]
    w3f = (masks.astype(jnp.float32) * w3[:, 0].astype(jnp.float32)[None, :]).T  # [h2, A]

    # MXU operands in compute_dtype (bf16 default); biases stay f32 for accuracy.
    x_c = x.astype(compute_dtype)
    w1_c = w1.astype(compute_dtype)
    w2_c = w2.astype(compute_dtype)
    w3f_c = w3f.astype(compute_dtype)
    b1_f = b1.astype(jnp.float32)
    b2_f = b2.astype(jnp.float32)

    a_col = a.reshape(-1, 1).astype(jnp.int32)                            # [B, 1]

    # Sublane alignment for the batch (second-minor) dim: 8 for 32-bit, 16 for bf16.
    sub = 8 if jnp.dtype(compute_dtype).itemsize >= 4 else 16

    # Pick the tile: aligned, no larger than the (aligned) batch, and small enough
    # that the grid has >= min_grid_steps steps when the batch allows (v7x megacore).
    b_aligned = _round_up(B, sub)
    cap = b_aligned
    if b_aligned >= min_grid_steps * sub:
        cap = _round_up(pl.cdiv(b_aligned, min_grid_steps), sub)
    tile_b = _round_up(min(max(int(tile_b), sub), cap), sub)

    b_pad = _round_up(B, tile_b)
    if b_pad != B:
        x_c = jnp.pad(x_c, ((0, b_pad - B), (0, 0)))
        a_col = jnp.pad(a_col, ((0, b_pad - B), (0, 0)))  # pad rows sliced off below

    grid = (b_pad // tile_b,)
    resident = lambda arr: pl.BlockSpec(arr.shape, lambda i: (0, 0))

    out = pl.pallas_call(
        action_nn_kernel,
        out_shape=jax.ShapeDtypeStruct((b_pad, 1), jnp.float32),
        grid_spec=pltpu.PrefetchScalarGridSpec(
            num_scalar_prefetch=0,
            grid=grid,
            in_specs=[
                pl.BlockSpec((tile_b, input_dims), lambda i: (i, 0)),   # x (pipelined)
                pl.BlockSpec((tile_b, 1), lambda i: (i, 0)),            # action index
                resident(w1_c), resident(b1_f),                         # weights stay
                resident(w2_c), resident(b2_f),                         # VMEM-resident
                resident(w3f_c),
            ],
            out_specs=pl.BlockSpec((tile_b, 1), lambda i: (i, 0)),
        ),
        compiler_params=pltpu.CompilerParams(
            dimension_semantics=("parallel",),   # batch tiles can shard across cores
        ),
    )(x_c, a_col, w1_c, b1_f, w2_c, b2_f, w3f_c)

    return out[:B]


def make_masks(num_actions, h2_dims, ppa):
    npa = int(np.floor(h2_dims * ppa))
    assert npa * num_actions <= h2_dims, 'Too many neurons per action!'
    masks = np.zeros((num_actions, h2_dims), dtype=np.float32)
    shared = h2_dims - npa * num_actions
    excl = 0
    for i in range(num_actions):
        masks[i, 0:shared] += 1.0
        masks[i, shared + excl: shared + excl + npa] += 1.0
        excl += npa
    return jnp.asarray(masks)


if __name__ == "__main__":
    # Small config consistent with the module's __init__
    input_dims, h1_dims, h2_dims = 32, 32, 32
    num_actions, ppa = 3, 0.1
    B = 40

    key = jax.random.PRNGKey(0)
    k = jax.random.split(key, 8)

    # Deterministic synthetic parameters (stored pre-transposed for y = x @ W + b)
    w1 = jax.random.normal(k[0], (input_dims, h1_dims), jnp.float32) * 0.1
    b1 = jax.random.normal(k[1], (1, h1_dims), jnp.float32) * 0.1
    w2 = jax.random.normal(k[2], (h1_dims, h2_dims), jnp.float32) * 0.1
    b2 = jax.random.normal(k[3], (1, h2_dims), jnp.float32) * 0.1
    w3 = jax.random.normal(k[4], (h2_dims, 1), jnp.float32) * 0.1
    masks = make_masks(num_actions, h2_dims, ppa)

    x = jax.random.normal(k[5], (B, input_dims), jnp.float32)
    a = jax.random.randint(k[6], (B,), 0, num_actions, jnp.int32)

    # Pure-JAX reference of the same forward pass
    x1_ref = jnp.maximum(x @ w1 + b1, 0.0)
    x2_ref = jnp.maximum(x1_ref @ w2 + b2, 0.0)
    ref = (x2_ref * masks[a]) @ w3

    # f32 compute path with a small tile (multi-step grid, exercises batch padding)
    out_f32 = action_nn_forward(x, a, w1, b1, w2, b2, w3, masks,
                                tile_b=16, compute_dtype=jnp.float32)
    out_f32 = jax.block_until_ready(out_f32)
    assert out_f32.shape == (B, 1)
    assert np.allclose(np.asarray(out_f32), np.asarray(ref), rtol=1e-5, atol=1e-5)

    # Default bf16 MXU-input path (f32 accumulation + f32 bias/relu/select)
    out_bf16 = action_nn_forward(x, a, w1, b1, w2, b2, w3, masks)
    out_bf16 = jax.block_until_ready(out_bf16)
    assert out_bf16.shape == (B, 1)
    assert np.allclose(np.asarray(out_bf16), np.asarray(ref), rtol=5e-2, atol=5e-2)

    print("KERNEL_OK")
</pallas_src>

<mosaic_0001>
module attributes {stable_mosaic.version = 11 : i64} {
  func.func @action_nn_kernel(%arg0: i32, %arg1: memref<16x32xf32, #tpu.memory_space<vmem>>, %arg2: memref<16x1xi32, #tpu.memory_space<vmem>>, %arg3: memref<32x32xf32, #tpu.memory_space<vmem>>, %arg4: memref<1x32xf32, #tpu.memory_space<vmem>>, %arg5: memref<32x32xf32, #tpu.memory_space<vmem>>, %arg6: memref<1x32xf32, #tpu.memory_space<vmem>>, %arg7: memref<32x3xf32, #tpu.memory_space<vmem>>, %arg8: memref<16x1xf32, #tpu.memory_space<vmem>>) attributes {dimension_semantics = [#tpu.dimension_semantics<parallel>], iteration_bounds = array<i64: 3>, scalar_prefetch = 0 : i64, scratch_operands = 0 : i64, tpu.core_type = #tpu.core_type<tc>, window_params = [{transform_indices = @transform_0, window_bounds = array<i64: 16, 32>}, {transform_indices = @transform_1, window_bounds = array<i64: 16, 1>}, {pipeline_mode = #tpu.pipeline_mode<synchronous>, transform_indices = @transform_2, window_bounds = array<i64: 32, 32>}, {pipeline_mode = #tpu.pipeline_mode<synchronous>, transform_indices = @transform_3, window_bounds = array<i64: 1, 32>}, {pipeline_mode = #tpu.pipeline_mode<synchronous>, transform_indices = @transform_4, window_bounds = array<i64: 32, 32>}, {pipeline_mode = #tpu.pipeline_mode<synchronous>, transform_indices = @transform_5, window_bounds = array<i64: 1, 32>}, {pipeline_mode = #tpu.pipeline_mode<synchronous>, transform_indices = @transform_6, window_bounds = array<i64: 32, 3>}, {transform_indices = @transform_7, window_bounds = array<i64: 16, 1>}]} {
    %c0 = arith.constant 0 : index
    %c0_0 = arith.constant 0 : index
    %0 = vector.load %arg3[%c0, %c0_0] : memref<32x32xf32, #tpu.memory_space<vmem>>, vector<32x32xf32>
    %c0_1 = arith.constant 0 : index
    %c0_2 = arith.constant 0 : index
    %1 = vector.load %arg5[%c0_1, %c0_2] : memref<32x32xf32, #tpu.memory_space<vmem>>, vector<32x32xf32>
    %c0_3 = arith.constant 0 : index
    %c0_4 = arith.constant 0 : index
    %2 = vector.load %arg7[%c0_3, %c0_4] : memref<32x3xf32, #tpu.memory_space<vmem>>, vector<32x3xf32>
    %c0_5 = arith.constant 0 : index
    %c0_6 = arith.constant 0 : index
    %3 = vector.load %arg1[%c0_5, %c0_6] : memref<16x32xf32, #tpu.memory_space<vmem>>, vector<16x32xf32>
    %cst = arith.constant dense<0.000000e+00> : vector<16x32xf32>
    %4 = tpu.matmul %3, %0, %cst {dimension_numbers = #tpu.dot_dimension_numbers<[1], [0], [0], [1], [0, 0, 1, 1], [], []>} : vector<16x32xf32>, vector<32x32xf32>, vector<16x32xf32> -> vector<16x32xf32>
    %c0_7 = arith.constant 0 : index
    %c0_8 = arith.constant 0 : index
    %5 = vector.load %arg4[%c0_7, %c0_8] : memref<1x32xf32, #tpu.memory_space<vmem>>, vector<1x32xf32>
    %6 = vector.broadcast %5 : vector<1x32xf32> to vector<16x32xf32>
    %7 = arith.addf %4, %6 : vector<16x32xf32>
    %cst_9 = arith.constant 0.000000e+00 : f32
    %8 = vector.broadcast %cst_9 : f32 to vector<16x32xf32>
    %9 = arith.maximumf %7, %8 : vector<16x32xf32>
    %cst_10 = arith.constant dense<0.000000e+00> : vector<16x32xf32>
    %10 = tpu.matmul %9, %1, %cst_10 {dimension_numbers = #tpu.dot_dimension_numbers<[1], [0], [0], [1], [0, 0, 1, 1], [], []>} : vector<16x32xf32>, vector<32x32xf32>, vector<16x32xf32> -> vector<16x32xf32>
    %c0_11 = arith.constant 0 : index
    %c0_12 = arith.constant 0 : index
    %11 = vector.load %arg6[%c0_11, %c0_12] : memref<1x32xf32, #tpu.memory_space<vmem>>, vector<1x32xf32>
    %12 = vector.broadcast %11 : vector<1x32xf32> to vector<16x32xf32>
    %13 = arith.addf %10, %12 : vector<16x32xf32>
    %cst_13 = arith.constant 0.000000e+00 : f32
    %14 = vector.broadcast %cst_13 : f32 to vector<16x32xf32>
    %15 = arith.maximumf %13, %14 : vector<16x32xf32>
    %cst_14 = arith.constant dense<0.000000e+00> : vector<16x3xf32>
    %16 = tpu.matmul %15, %2, %cst_14 {dimension_numbers = #tpu.dot_dimension_numbers<[1], [0], [0], [1], [0, 0, 1, 1], [], []>} : vector<16x32xf32>, vector<32x3xf32>, vector<16x3xf32> -> vector<16x3xf32>
    %c0_15 = arith.constant 0 : index
    %c0_16 = arith.constant 0 : index
    %17 = vector.load %arg2[%c0_15, %c0_16] : memref<16x1xi32, #tpu.memory_space<vmem>>, vector<16x1xi32>
    %18 = tpu.iota {dimensions = array<i32: 1>} : vector<16x3xi32>
    %19 = vector.broadcast %17 : vector<16x1xi32> to vector<16x3xi32>
    %20 = arith.cmpi eq, %18, %19 : vector<16x3xi32>
    %cst_17 = arith.constant 0.000000e+00 : f32
    %21 = vector.broadcast %cst_17 : f32 to vector<16x3xf32>
    %22 = arith.select %20, %16, %21 : vector<16x3xi1>, vector<16x3xf32>
    %cst_18 = arith.constant dense<0.000000e+00> : vector<16xf32>
    %23 = vector.multi_reduction <add>, %22, %cst_18 [1] : vector<16x3xf32> to vector<16xf32>
    %24 = vector.shape_cast %23 : vector<16xf32> to vector<16x1xf32>
    %c0_19 = arith.constant 0 : index
    %c0_20 = arith.constant 0 : index
    %25 = vector.load %arg8[%c0_19, %c0_20] : memref<16x1xf32, #tpu.memory_space<vmem>>, vector<16x1xf32>
    tpu.vector_store %arg8[%c0_19, %c0_20], %24 {strides = array<i32>} : memref<16x1xf32, #tpu.memory_space<vmem>>, vector<16x1xf32>,
    return
  }
  func.func @transform_0(%arg0: i32) -> (i32, i32) {
    %c0_i32 = arith.constant 0 : i32
    %c0_i32_0 = arith.constant 0 : i32
    return %arg0, %c0_i32 : i32, i32
  }
  func.func @transform_1(%arg0: i32) -> (i32, i32) {
    %c0_i32 = arith.constant 0 : i32
    %c0_i32_0 = arith.constant 0 : i32
    return %arg0, %c0_i32 : i32, i32
  }
  func.func @transform_2(%arg0: i32) -> (i32, i32) {
    %c0_i32 = arith.constant 0 : i32
    %c0_i32_0 = arith.constant 0 : i32
    %c0_i32_1 = arith.constant 0 : i32
    return %c0_i32, %c0_i32_0 : i32, i32
  }
  func.func @transform_3(%arg0: i32) -> (i32, i32) {
    %c0_i32 = arith.constant 0 : i32
    %c0_i32_0 = arith.constant 0 : i32
    %c0_i32_1 = arith.constant 0 : i32
    return %c0_i32, %c0_i32_0 : i32, i32
  }
  func.func @transform_4(%arg0: i32) -> (i32, i32) {
    %c0_i32 = arith.constant 0 : i32
    %c0_i32_0 = arith.constant 0 : i32
    %c0_i32_1 = arith.constant 0 : i32
    return %c0_i32, %c0_i32_0 : i32, i32
  }
  func.func @transform_5(%arg0: i32) -> (i32, i32) {
    %c0_i32 = arith.constant 0 : i32
    %c0_i32_0 = arith.constant 0 : i32
    %c0_i32_1 = arith.constant 0 : i32
    return %c0_i32, %c0_i32_0 : i32, i32
  }
  func.func @transform_6(%arg0: i32) -> (i32, i32) {
    %c0_i32 = arith.constant 0 : i32
    %c0_i32_0 = arith.constant 0 : i32
    %c0_i32_1 = arith.constant 0 : i32
    return %c0_i32, %c0_i32_0 : i32, i32
  }
  func.func @transform_7(%arg0: i32) -> (i32, i32) {
    %c0_i32 = arith.constant 0 : i32
    %c0_i32_0 = arith.constant 0 : i32
    return %arg0, %c0_i32 : i32, i32
  }
}

</mosaic_0001>

<bundles_post_ra>
// kernel: tpu_custom_call.1
= control target key start
LH: loop header
LB: loop body
LE: loop exit
PB: predicated region body
PF: predicated region fallthrough
CT: control target
= control target key end

     0   :  { %s827_s24 = smov 0   ;;  %s900_s0 = inlined_call_operand.vmem [shape: f32[48,32], index: 0, kind: input, shape index: {}]   ;;  %s901_s1 = inlined_call_operand.vmem [shape: s32[48,1], index: 1, kind: input, shape index: {}]   ;;  %s902_s2 = inlined_call_operand.vmem [shape: f32[32,32], index: 2, kind: input, shape index: {}]   ;;  %s903_s3 = inlined_call_operand.vmem [shape: f32[1,32], index: 3, kind: input, shape index: {}]   ;;  %s904_s4 = inlined_call_operand.vmem [shape: f32[32,32], index: 4, kind: input, shape index: {}]   ;;  %s905_s5 = inlined_call_operand.vmem [shape: f32[1,32], index: 5, kind: input, shape index: {}]   ;;  %s906_s6 = inlined_call_operand.vmem [shape: f32[32,3], index: 6, kind: input, shape index: {}]   ;;  %s907_s7 = inlined_call_operand.vmem [shape: f32[48,1], index: 7, kind: output, shape index: {}]  }
   0x1 LB: > { %s672_s25 = sadd.s32 4294967295, %s784_s24   ;;  %p676_p0 = scmp.ge.s32.totalorder %s784_s24, 1  ;;  %s784_s24 = sphi %s827_s24, %s17_s24  }
   0x2   : > { %p249_p1 = scmp.lt.s32.totalorder %s784_s24, 4 }
   0x4   : > { %p250_p2 = pnand %p676_p0, %p249_p1 }
   0x5   : > { %v304_v0 = vld [vmem:[%s902_s2] sm:$0xff] (!%p250_p2)  ;;  %v305_v1 = vld [vmem:[%s902_s2 + $0x8] sm:$0xff] (!%p250_p2)  ;;  %v306_v2 = vld [vmem:[%s902_s2 + $0x10] sm:$0xff] (!%p250_p2)  ;;  %s677_s9 = sshll.u32 (!%p250_p2), %s672_s25, 1  ;;  %vm325_vm0 = vcmask (!%p250_p2), 261120   ;;  %v786_v27 = vmov (!%p250_p2), 0   ;;  %v582_v37 = vlaneseq (!%p250_p2) }
   0x6   : > { %253 = sbr.rel (%p250_p2) target bundleno = 816 (0x330), region = 48  ;;  %v744_v3 = vpack.c.bf16 (!%p250_p2), %v305_v1, %v304_v0  ;;  %v307_v4 = vld [vmem:[%s902_s2 + $0x18] sm:$0xff] (!%p250_p2)  ;;  %p287_p3 = scmp.lt.s32.totalorder (!%p250_p2), %s677_s9, 5  ;;  %v308_v5 = vld [vmem:[%s904_s4] sm:$0xff] (!%p250_p2)  ;;  %v309_v6 = vld [vmem:[%s904_s4 + $0x8] sm:$0xff] (!%p250_p2)  ;;  %777 = vset.pattern.permute.xlu0 (!%p250_p2), %v786_v27  ;;  %vm594_vm2 = vcmask (!%p250_p2), 23552  }
   0x7   : > { %v748_v7 = vpack.c.bf16 (!%p250_p2), %v307_v4, %v306_v2  ;;  %v752_v8 = vpack.c.bf16 (!%p250_p2), %v309_v6, %v308_v5  ;;  %v310_v11 = vld [vmem:[%s904_s4 + $0x10] sm:$0xff] (!%p250_p2)  ;;  %v311_v12 = vld [vmem:[%s904_s4 + $0x18] sm:$0xff] (!%p250_p2)  ;;  %v312_v14 = vld [vmem:[%s906_s6] sm:$0xff] (!%p250_p2)  ;;  %v583_v39 = vand.u32 (!%p250_p2), 127, %v582_v37  ;;  %vm601_vm4 = vcmask (!%p250_p2), 7168  }
   0x8   : > { %745 = vmatprep.subr.bf16.mxu0 (!%p250_p2), %v744_v3  ;;  %v756_v13 = vpack.c.bf16 (!%p250_p2), %v311_v12, %v310_v11  ;;  %v313_v15 = vld [vmem:[%s906_s6 + $0x8] sm:$0xff] (!%p250_p2)  ;;  %v683_v17 = vld [vmem:[%s903_s3] ss:$0 sm:$0xff] (!%p250_p2)  ;;  %v314_v24 = vld [vmem:[%s906_s6 + $0x10] sm:$0xff] (!%p250_p2) }
   0x9   : > { %747 = vmatpush3.bf16.msra.mxu0 (!%p250_p2), %v744_v3  ;;  %753 = vmatprep.subr.bf16.mxu1 (!%p250_p2), %v752_v8  ;;  %v760_v16 = vpack.c.bf16 (!%p250_p2), %v313_v15, %v312_v14  ;;  %v315_v25 = vld [vmem:[%s906_s6 + $0x18] sm:$0xff] (!%p250_p2)  ;;  %v686_v30 = vld [vmem:[%s905_s5] ss:$0 sm:$0xff] (!%p250_p2) }
   0xa   : > { %749 = vmatprep.subr.bf16.mxu0 (!%p250_p2), %v748_v7  ;;  %755 = vmatpush3.bf16.msra.mxu1 (!%p250_p2), %v752_v8  ;;  %v764_v26 = vpack.c.bf16 (!%p250_p2), %v315_v25, %v314_v24 }
   0xb   : > { %757 = vmatprep.subr.bf16.mxu1 (!%p250_p2), %v756_v13 }
   0xd   : > { %s909_s9 = smov (!%p287_p3, %s677_s9), 5  ;;  %751 = vmatpush3.bf16.msra.mxu0 %v748_v7 }
   0xe   : > { %s853_s16 = sshll.u32 %s909_s9, 3  ;;  %759 = vmatpush3.bf16.msra.mxu1 %v756_v13  ;;  %761 = vmatprep.subr.bf16.mxu0 %v760_v16 }
   0xf   : > { %s290_s19 = scalar_lea.vmem %s900_s0, %s853_s16  ;;  %s296_s14 = scalar_lea.vmem %s901_s1, %s853_s16 }
  0x10   : > { %v316_v9 = vld [vmem:[%s290_s19] sm:$0xff]  ;;  %v317_v10 = vld [vmem:[%s290_s19 + $0x8] sm:$0xff]  ;;  %s302_s20 = scalar_lea.vmem %s907_s7, %s853_s16 }
  0x11   : > { %719 = vmatprep.mubr.msk.f32.mxu0 %vm325_vm0, %v316_v9  ;;  %v580_v28 = vld [vmem:[%s296_s14] sm:$0xff]  ;;  %v581_v29 = vld [vmem:[%s296_s14 + $0x8] sm:$0xff] }
  0x12   : > { %720 = vmatmul.mubr.msk.f32.vlgmr.msra.gmra.mrb[0].mxu0 %vm325_vm0, %v317_v10  ;;  %585 = vperm.xlu0 %777, %v580_v28  }
  0x13   : > { %763 = vmatpush3.bf16.msra.mxu0 %v760_v16 }
  0x14   : > { %765 = vmatprep.subr.bf16.mxu0 %v764_v26 }
  0x16   : > { %588 = vperm.xlu0 %777, %v581_v29  }
  0x17   : > { %767 = vmatpush3.bf16.msra.mxu0 %v764_v26 }
  0x91   : > { %v586_v38 = vpop.permute.xlu0 %585 }
  0x92   : > { %vm590_vm1 = vcmp.eq.s32.totalorder %v583_v39, %v586_v38 }
  0x95   : > { %v589_v40 = vpop.permute.xlu0 %588 }
  0x96   : > { %vm591_vm3 = vcmp.eq.s32.totalorder %v583_v39, %v589_v40 }
  0xe5   : > { %v721_v18 = vpop.f32.mrb[0].mxu0 }
  0xe6   : > { %v404_v19 = vadd.f32 %v721_v18, %v683_v17  ;;  %v398_v20 = vpop.f32.mrb[1].mxu0 }
  0xe7   : > { %v399_v21 = vadd.f32 %v683_v17, %v398_v20 }
  0xe8   : > { %v408_v23 = vmax.f32 %v404_v19, 0.0 }
  0xe9   : > { %v407_v22 = vmax.f32 %v399_v21, 0.0 }
  0xeb   : > { %730 = vmatprep.mubr.msk.f32.mxu1 %vm325_vm0, %v407_v22 }
  0xec   : > { %731 = vmatmul.mubr.msk.f32.vlgmr.msra.gmra.mrb[0].mxu1 %vm325_vm0, %v408_v23 }
 0x1bf   : > { %v732_v31 = vpop.f32.mrb[0].mxu1 }
 0x1c0   : > { %v494_v32 = vadd.f32 %v732_v31, %v686_v30  ;;  %v488_v33 = vpop.f32.mrb[1].mxu1 }
 0x1c1   : > { %v489_v34 = vadd.f32 %v686_v30, %v488_v33 }
 0x1c2   : > { %v498_v36 = vmax.f32 %v494_v32, 0.0 }
 0x1c3   : > { %v497_v35 = vmax.f32 %v489_v34, 0.0 }
 0x1c5   : > { %741 = vmatprep.mubr.msk.f32.mxu0 %vm325_vm0, %v497_v35 }
 0x1c6   : > { %742 = vmatmul.mubr.msk.f32.vlgmr.msra.gmra.mrb[2].mxu0 %vm325_vm0, %v498_v36 }
 0x299   : > { %v743_v41 = vpop.f32.mrb[2].mxu0 }
 0x29a   : > { %v571_v42 = vpop.f32.mrb[3].mxu0  ;;  %v593_v45 = vsel %vm591_vm3, %v743_v41, 0.0 }
 0x29b   : > { %v592_v43 = vsel %vm590_vm1, %v571_v42, 0.0  ;;  %v598_v46 = vsel %vm594_vm2, %v593_v45, 0.0 }
 0x29c   : > { %v595_v44 = vsel %vm594_vm2, %v592_v43, 0.0 }
 0x29d   : > { %596 = vadd.xlane.f32.xlu1 %v595_v44 }
 0x2a1   : > { %599 = vadd.xlane.f32.xlu1 %v598_v46 }
 0x32a   : > { %v597_v47 = vpop.xlane.xlu1 %596 }
 0x32b   : > { %602 = vst.msk [vmem:[%s302_s20] sm:$0xff] %vm601_vm4, %v597_v47 }
 0x32e   : > { %v600_v48 = vpop.xlane.xlu1 %599 }
 0x32f   : > { %603 = vst.msk [vmem:[%s302_s20 + $0x8] sm:$0xff] %vm601_vm4, %v600_v48 }
 0x330 PF: > { %s17_s24 = sadd.s32 1, %s784_s24  }
 0x331   : > { %p14_p4 = scmp.ge.s32.totalorder %s17_s24, 5  }
 0x333   :  { %16 = sbr.rel (!%p14_p4) target bundleno = 1 (0x1), region = 81 }

</bundles_post_ra>
